<compile_context>
chip_gen: v5e
topology: v5e:2x2
jax: 0.10.0
libtpu: 0.0.40
codegen_flags: <defaults>
</compile_context>

<pallas_src>
import jax
import jax.numpy as jnp
from jax.experimental import pallas as pl
from jax.experimental.pallas import tpu as pltpu

EPS = 1e-5
_LANE = 128
_BLOCK_F32_BUDGET = 4 * 1024 * 1024  # ~4 MiB per f32 block keeps us safe on every generation


def _instance_norm_kernel(x_ref, o_ref):
    # x_ref block: (1, L, TC). Normalize over L (axis=1) independently per channel.
    x = x_ref[...].astype(jnp.float32)
    mean = jnp.mean(x, axis=1, keepdims=True)                    # (1, 1, TC)
    centered = x - mean
    var = jnp.mean(centered * centered, axis=1, keepdims=True)   # biased variance
    inv = jax.lax.rsqrt(var + EPS)
    o_ref[...] = (centered * inv).astype(o_ref.dtype)


def _pick_channel_tile(L, C_pad):
    """Largest multiple of 128 that divides C_pad and keeps an f32 block <= budget."""
    for cand in range(C_pad, _LANE - 1, -_LANE):
        if C_pad % cand == 0 and L * cand * 4 <= _BLOCK_F32_BUDGET:
            return cand
    # Fallback: minimum lane-dense tile (only hit for very large L).
    # TODO(synk): for extreme L where even (1, L, 128) f32 blows VMEM, switch to a two-level
    # scheme (L as an "arbitrary" reduction axis accumulating sum / sum-of-squares).
    return _LANE


def transpose_instance_norm(x):
    """x: (B, L, C) -> (B, L, C), equivalent to
    InstanceNorm1d(C)(x.transpose(1, 2)).transpose(1, 2) in PyTorch (affine=False)."""
    B, L, C = x.shape

    # Pad channels so the last block dim is a multiple of 128 (lane-dense stores).
    C_pad = ((C + _LANE - 1) // _LANE) * _LANE
    if C_pad != C:
        x_in = jnp.pad(x, ((0, 0), (0, 0), (0, C_pad - C)))
    else:
        x_in = x

    tc = _pick_channel_tile(L, C_pad)
    grid = (B, C_pad // tc)

    # Double-buffered in + out blocks plus f32 intermediates; be generous but stay within
    # v7x's 64 MiB physical VMEM for the tile sizes we pick.
    block_f32_bytes = L * tc * 4
    vmem_limit = int(min(96 * 1024 * 1024, max(32 * 1024 * 1024, 10 * block_f32_bytes)))

    out = pl.pallas_call(
        _instance_norm_kernel,
        out_shape=jax.ShapeDtypeStruct((B, L, C_pad), x.dtype),
        grid_spec=pltpu.PrefetchScalarGridSpec(
            num_scalar_prefetch=0,
            grid=grid,
            in_specs=[pl.BlockSpec((1, L, tc), lambda b, c: (b, 0, c))],
            out_specs=pl.BlockSpec((1, L, tc), lambda b, c: (b, 0, c)),
        ),
        compiler_params=pltpu.CompilerParams(
            dimension_semantics=("parallel", "parallel"),
            vmem_limit_bytes=vmem_limit,
        ),
    )(x_in)

    if C_pad != C:
        out = out[:, :, :C]
    return out


def _reference(x):
    # Pure-JAX reference mirroring torch.nn.InstanceNorm1d semantics.
    xf = x.astype(jnp.float32)
    mean = jnp.mean(xf, axis=1, keepdims=True)
    var = jnp.mean((xf - mean) ** 2, axis=1, keepdims=True)
    return ((xf - mean) / jnp.sqrt(var + EPS)).astype(x.dtype)


if __name__ == "__main__":
    # Small shapes consistent with the module: batch=2, seq=16, channels=32.
    key = jax.random.PRNGKey(0)
    B, L, C = 2, 16, 32
    x = jax.random.normal(key, (B, L, C), dtype=jnp.float32)

    out = transpose_instance_norm(x)
    out = jax.block_until_ready(out)

    ref = _reference(x)
    assert out.shape == (B, L, C)
    assert jnp.allclose(out, ref, atol=1e-5, rtol=1e-5), "mismatch vs reference"

    # Also sanity-check a lane-dense, multi-tile case (C multiple of 128, several C tiles).
    B2, L2, C2 = 2, 64, 384
    x2 = jax.random.normal(jax.random.PRNGKey(1), (B2, L2, C2), dtype=jnp.float32)
    out2 = jax.block_until_ready(transpose_instance_norm(x2))
    assert jnp.allclose(out2, _reference(x2), atol=1e-5, rtol=1e-5), "mismatch vs reference (large)"

    print("KERNEL_OK")
</pallas_src>

<mosaic_0001>
module attributes {stable_mosaic.version = 11 : i64} {
  func.func @_instance_norm_kernel(%arg0: i32, %arg1: i32, %arg2: memref<1x16x128xf32, #tpu.memory_space<vmem>>, %arg3: memref<1x16x128xf32, #tpu.memory_space<vmem>>) attributes {dimension_semantics = [#tpu.dimension_semantics<parallel>, #tpu.dimension_semantics<parallel>], iteration_bounds = array<i64: 2, 1>, scalar_prefetch = 0 : i64, scratch_operands = 0 : i64, tpu.core_type = #tpu.core_type<tc>, window_params = [{transform_indices = @transform_0, window_bounds = array<i64: 1, 16, 128>}, {transform_indices = @transform_1, window_bounds = array<i64: 1, 16, 128>}]} {
    %c0 = arith.constant 0 : index
    %c0_0 = arith.constant 0 : index
    %c0_1 = arith.constant 0 : index
    %0 = vector.load %arg2[%c0, %c0_0, %c0_1] : memref<1x16x128xf32, #tpu.memory_space<vmem>>, vector<1x16x128xf32>
    %cst = arith.constant dense<0.000000e+00> : vector<1x128xf32>
    %1 = vector.multi_reduction <add>, %0, %cst [1] : vector<1x16x128xf32> to vector<1x128xf32>
    %2 = vector.shape_cast %1 : vector<1x128xf32> to vector<1x1x128xf32>
    %cst_2 = arith.constant 1.600000e+01 : f32
    %3 = vector.broadcast %cst_2 : f32 to vector<1x1x128xf32>
    %4 = arith.divf %2, %3 : vector<1x1x128xf32>
    %5 = vector.broadcast %4 : vector<1x1x128xf32> to vector<1x16x128xf32>
    %6 = arith.subf %0, %5 : vector<1x16x128xf32>
    %7 = arith.mulf %6, %6 : vector<1x16x128xf32>
    %cst_3 = arith.constant dense<0.000000e+00> : vector<1x128xf32>
    %8 = vector.multi_reduction <add>, %7, %cst_3 [1] : vector<1x16x128xf32> to vector<1x128xf32>
    %9 = vector.shape_cast %8 : vector<1x128xf32> to vector<1x1x128xf32>
    %cst_4 = arith.constant 1.600000e+01 : f32
    %10 = vector.broadcast %cst_4 : f32 to vector<1x1x128xf32>
    %11 = arith.divf %9, %10 : vector<1x1x128xf32>
    %cst_5 = arith.constant 9.99999974E-6 : f32
    %12 = vector.broadcast %cst_5 : f32 to vector<1x1x128xf32>
    %13 = arith.addf %11, %12 : vector<1x1x128xf32>
    %14 = math.rsqrt %13 : vector<1x1x128xf32>
    %15 = vector.broadcast %14 : vector<1x1x128xf32> to vector<1x16x128xf32>
    %16 = arith.mulf %6, %15 : vector<1x16x128xf32>
    %c0_6 = arith.constant 0 : index
    %c0_7 = arith.constant 0 : index
    %c0_8 = arith.constant 0 : index
    %17 = vector.load %arg3[%c0_6, %c0_7, %c0_8] : memref<1x16x128xf32, #tpu.memory_space<vmem>>, vector<1x16x128xf32>
    tpu.vector_store %arg3[%c0_6, %c0_7, %c0_8], %16 {strides = array<i32>} : memref<1x16x128xf32, #tpu.memory_space<vmem>>, vector<1x16x128xf32>,
    return
  }
  func.func @transform_0(%arg0: i32, %arg1: i32) -> (i32, i32, i32) {
    %c0_i32 = arith.constant 0 : i32
    %c0_i32_0 = arith.constant 0 : i32
    return %arg0, %c0_i32, %arg1 : i32, i32, i32
  }
  func.func @transform_1(%arg0: i32, %arg1: i32) -> (i32, i32, i32) {
    %c0_i32 = arith.constant 0 : i32
    %c0_i32_0 = arith.constant 0 : i32
    return %arg0, %c0_i32, %arg1 : i32, i32, i32
  }
}

</mosaic_0001>

<bundles_post_ra>
// kernel: tpu_custom_call.1
= control target key start
LH: loop header
LB: loop body
LE: loop exit
PB: predicated region body
PF: predicated region fallthrough
CT: control target
= control target key end

     0   :  { %6 = vsyncpa [#allocation3], 0  ;;  %s641_s0 = inlined_call_operand.hbm [shape: f32[2,16,128], index: 0, kind: input, shape index: {}]   ;;  %s642_s1 = inlined_call_operand.hbm [shape: f32[2,16,128], index: 1, kind: output, shape index: {}]  }
   0x1   :  { %8 = vsyncpa [#allocation3 + $0x1], 0 }
   0x2   :  { %9 = vsyncpa [#allocation4], 0 }
   0x3   :  { %11 = vsyncpa [#allocation4 + $0x1], 0  ;;  %s517_s6 = smov 0   ;;  %s519_s7 = smov 0  }
   0x4   :  { %s521_s8 = smov 0   ;;  %s523_s9 = smov 0  }
   0x5   :  { %s525_s10 = smov 0   ;;  %s527_s11 = smov 0  }
   0x6 LB: > { %s300_s12 = sadd.s32 4294967295, %s500_s11   ;;  %s301_s13 = sadd.s32 4294967294, %s500_s11   ;;  %s500_s11 = sphi %s527_s11, %s17_s11   ;;  %s496_s10 = sphi %s525_s10, %s651_s10   ;;  %s492_s9 = sphi %s523_s9, %s650_s9   ;;  %s488_s8 = sphi %s521_s8, %s649_s8   ;;  %s484_s7 = sphi %s519_s7, %s648_s7   ;;  %s480_s6 = sphi %s517_s6, %s647_s6  }
   0x7   : > { %s29_s14 = sadd.s32 1, %s496_s10  ;;  %s38_s15 = sadd.s32 1, %s488_s8 }
   0x8   : > { %p31_p0 = scmp.ge.s32.totalorder %s29_s14, 2  ;;  %p45_p1 = scmp.ne.s32.totalorder %s488_s8, %s484_s7 }
   0x9   : > { %p46_p2 = scmp.eq.s32.totalorder %s500_s11, 0  ;;  %p51_p3 = scmp.ne.s32.totalorder %s484_s7, %s480_s6 }
   0xa   : > { %s653_s14 = smov (%p31_p0, %s29_s14), 0  ;;  %p52_p5 = scmp.eq.s32.totalorder %s300_s12, 0 }
   0xb   : > { %p558_p4 = por %p46_p2, %p45_p1  ;;  %s33_s17 = ssub.s32 %s496_s10, %s653_s14 }
   0xc   : > { %p77_p6 = scmp.eq.s32.totalorder %s300_s12, 1  ;;  %p36_p7 = scmp.eq.s32.totalorder %s33_s17, 0 }
   0xd   : > { %p564_p8 = por %p52_p5, %p51_p3  ;;  %p83_p10 = scmp.eq.s32.totalorder %s301_s13, 1 }
   0xe   : > { %p568_p9 = por %p77_p6, %p45_p1  ;;  %p303_p12 = scmp.ge.s32.totalorder %s500_s11, 2 }
   0xf   : > { %s573_s20 = scalar_select %p36_p7, %s488_s8, %s38_s15  }
  0x10   : > { %p575_p11 = por %p83_p10, %p51_p3  ;;  %p329_p13 = scmp.lt.s32.totalorder %s500_s11, 2 }
  0x11   : > { %s103_s22 = sand.u32 1, %s488_s8   ;;  %s315_s24 = sshll.u32 %s496_s10, 4 }
  0x12   : > { %s304_s23 = sshll.u32 %s103_s22, 4  ;;  %s113_s27 = scalar_lea.hbm %s641_s0, %s315_s24 }
  0x13   : > { %s107_s28 = scalar_lea.vmem [#allocation2], %s304_s23  ;;  %s114_s30 = sshll.u32 %s113_s27, 4  ;;  %s115_s30 = int_to_ptr.hbm [resolvable:$true] %s114_s30 }
  0x14   : > { %s116_s29 = sshll.u32 %s107_s28, 4  ;;  %p322_p0 = pnand %p329_p13, %p558_p4  ;;  %s117_s29 = int_to_ptr.vmem [resolvable:$true] %s116_s29 }
  0x15   : > { %p307_p1 = scmp.ge.s32.totalorder %s500_s11, 1  ;;  %s104_s2 = scalar_lea.sflag [#allocation3], %s103_s22 }
  0x16   : > { %s502_s3 = smov 128   ;;  %s503_s4 = smov 8  }
  0x17   : > { %324 = dma.hbm_to_vmem [thread:$0]  (!%p322_p0), %s115_s30, 256, %s117_s29, %s104_s2, %s502_s3, %s502_s3, %s503_s4  }
  0x18   : > { %p124_p2 = scmp.lt.s32.totalorder %s500_s11, 3 }
  0x1a   : > { %p125_p3 = pnand %p307_p1, %p124_p2 }
  0x1b   : > { %s591_s5 = sand.u32 (!%p125_p3), 1, %s484_s7  }
  0x1c   : > { %128 = sbr.rel (%p125_p3) target bundleno = 100 (0x64), region = 24  ;;  %s308_s12 = sshll.u32 (!%p125_p3), %s591_s5, 4 }
  0x1d   : > { %s131_s13 = scalar_lea.sflag (!%p125_p3), [#allocation3], %s591_s5  ;;  %s134_s15 = scalar_lea.vmem (!%p125_p3), [#allocation2], %s308_s12 }
  0x21   : > { %471 = dma.done.wait (%p564_p8), %s131_s13, 256  }
  0x22   : > { %473 = vsyncadd (%p564_p8), %s131_s13, 4294967040  ;;  %v504_v0 = vmov 16.0   ;;  %v154_v2 = vld [vmem:[%s134_s15] sm:$0xff]  ;;  %v155_v3 = vld [vmem:[%s134_s15 + $0x8] sm:$0xff]  ;;  %s316_s16 = sshll.u32 %s492_s9, 4  ;;  %s153_s23 = scalar_lea.vmem [#allocation5], %s308_s12 }
  0x23   : > { %384 = vrcp.f32 %v504_v0  ;;  %v156_v4 = vadd.f32 %v155_v3, %v154_v2  ;;  %s211_s22 = scalar_lea.hbm %s642_s1, %s316_s16  ;;  %s212_s24 = sshll.u32 %s153_s23, 4  ;;  %s213_s24 = int_to_ptr.vmem [resolvable:$true] %s212_s24 }
  0x24   : > { %s214_s25 = sshll.u32 %s211_s22, 4  ;;  %s199_s9 = scalar_lea.sflag [#allocation4], %s591_s5  ;;  %s215_s25 = int_to_ptr.hbm [resolvable:$true] %s214_s25 }
  0x25   : > { %v157_v6 = vrot.slane %v156_v4, 4  ;;  %s432_s26 = sshra.s32 %s215_s25, 4  ;;  %s438_s30 = scalar_lea.hbm %s642_s1, 32  ;;  %s433_s26 = int_to_ptr.hbm [resolvable:$true] %s432_s26 }
  0x26   : > { %s434_s27 = scalar_lea.hbm %s433_s26, 16  ;;  %p439_p7 = scmp.lt.s32.totalorder %s433_s26, %s642_s1 }
  0x27   : > { %v158_v8 = vadd.f32 %v157_v6, %v156_v4  ;;  %p435_p4 = scmp.ne.s32.totalorder %s433_s26, %s434_s27  ;;  %p440_p8 = scmp.lt.s32.totalorder %s438_s30, %s434_s27 }
  0x29   : > { %v385_v1 = vpop.eup %384  ;;  %v159_v10 = vrot.slane %v158_v8, 2  ;;  %p436_p5 = pnand %p435_p4, %p568_p9  ;;  %p441_p10 = por %p440_p8, %p439_p7 }
  0x2a   : > { %v164_v5 = vmul.f32 16.0, %v385_v1  ;;  %vm168_vm0 = vweird.f32 %v385_v1 }
  0x2b   : > { %v160_v12 = vadd.f32 %v159_v10, %v158_v8  ;;  %p437_p6 = pneg %p436_p5 }
  0x2c   : > { %v165_v7 = vsub.f32 1.0, %v164_v5 }
  0x2d   : > { %v161_v13 = vrot.slane %v160_v12, 1  ;;  %p442_p13 = pnand %p441_p10, %p437_p6 }
  0x2e   : > { %v166_v9 = vmul.f32 %v385_v1, %v165_v7 }
  0x2f   : > { %v162_v15 = vadd.f32 %v161_v13, %v160_v12 }
  0x30   : > { %v167_v11 = vadd.f32 %v385_v1, %v166_v9 }
  0x32   : > { %v169_v14 = vsel %vm168_vm0, %v385_v1, %v167_v11 }
  0x33   : > { %v170_v16 = vmul.f32 %v169_v14, %v162_v15 }
  0x35   : > { %v171_v17 = vsub.f32 %v154_v2, %v170_v16  ;;  %v172_v18 = vsub.f32 %v155_v3, %v170_v16 }
  0x37   : > { %v173_v19 = vmul.f32 %v171_v17, %v171_v17  ;;  %v174_v20 = vmul.f32 %v172_v18, %v172_v18 }
  0x39   : > { %v175_v21 = vadd.f32 %v174_v20, %v173_v19 }
  0x3b   : > { %v176_v22 = vrot.slane %v175_v21, 4 }
  0x3d   : > { %v177_v23 = vadd.f32 %v176_v22, %v175_v21 }
  0x3f   : > { %v178_v24 = vrot.slane %v177_v23, 2 }
  0x41   : > { %v179_v25 = vadd.f32 %v178_v24, %v177_v23 }
  0x43   : > { %v180_v26 = vrot.slane %v179_v25, 1 }
  0x45   : > { %v181_v27 = vadd.f32 %v180_v26, %v179_v25 }
  0x47   : > { %v182_v28 = vmul.f32 %v181_v27, %v169_v14 }
  0x49   : > { %v183_v29 = vadd.f32 1e-05, %v182_v28 }
  0x4b   : > { %386 = vrsqrt.f32 %v183_v29  ;;  %vm190_vm1 = vweird.f32 %v183_v29 }
  0x51   : > { %v387_v30 = vpop.eup %386 }
  0x52   : > { %v185_v31 = vmul.f32 %v387_v30, %v183_v29  ;;  %vm191_vm2 = vweird.f32 %v387_v30 }
  0x53   : > { %vm192_vm3 = vmor %vm190_vm1, %vm191_vm2 }
  0x54   : > { %v186_v32 = vmul.f32 %v387_v30, %v185_v31 }
  0x56   : > { %v187_v33 = vmul.f32 0.5, %v186_v32 }
  0x58   : > { %v188_v34 = vsub.f32 1.5, %v187_v33 }
  0x5a   : > { %v189_v35 = vmul.f32 %v387_v30, %v188_v34 }
  0x5c   : > { %v193_v36 = vsel %vm192_vm3, %v387_v30, %v189_v35 }
  0x5d   : > { %v194_v37 = vmul.f32 %v193_v36, %v171_v17  ;;  %v195_v38 = vmul.f32 %v193_v36, %v172_v18 }
  0x5f   : > { %196 = vst [vmem:[%s153_s23] sm:$0xff] %v194_v37 }
  0x60   : > { %197 = vst [vmem:[%s153_s23 + $0x8] sm:$0xff] %v195_v38 }
  0x61   : > { %445 = shalt.err (!%p442_p13)
}
  0x62   : > { %s505_s4 = smov 128   ;;  %s506_s5 = smov 8  }
  0x63   : > { %319 = dma.vmem_to_hbm [thread:$0]  (%p568_p9), %s213_s24, 256, %s215_s25, %s199_s9, %s505_s4, %s505_s4, %s506_s5  }
  0x64 PF: > { %s229_s12 = sand.u32 1, %s480_s6   ;;  %p326_p0 = pnand %p303_p12, %p575_p11 }
  0x65   : > { %s230_s13 = scalar_lea.sflag [#allocation4], %s229_s12 }
  0x66   : > { %p327_p1 = pneg %p326_p0 }
  0x68   : > { %475 = dma.done.wait (%p327_p1), %s230_s13, 256  }
  0x69   : > { %477 = vsyncadd (%p327_p1), %s230_s13, 4294967040  ;;  %s17_s11 = sadd.s32 1, %s500_s11   ;;  %s647_s6 = smov %s484_s7 }
  0x6a   : > { %p14_p2 = scmp.ge.s32.totalorder %s17_s11, 4   ;;  %s648_s7 = smov %s488_s8 }
  0x6b   : > { %s649_s8 = smov %s573_s20  ;;  %s650_s9 = smov %s496_s10 }
  0x6c   : > { %s651_s10 = smov %s653_s14  ;;  %16 = sbr.rel (!%p14_p2) target bundleno = 6 (0x6), region = 69 }
  0x71   :  { %236 = vsyncpa [#allocation3], 1 }
  0x72   :  { %238 = vsyncpa [#allocation3 + $0x1], 1 }
  0x73   :  { %239 = vsyncpa [#allocation4], 1 }
  0x74   :  { %241 = vsyncpa [#allocation4 + $0x1], 1 }

</bundles_post_ra>
